<compile_context>
chip_gen: v7x
topology: tpu7x:2x2x1
jax: 0.10.0
libtpu: 0.0.40
codegen_flags: <defaults>
</compile_context>

<pallas_src>
import numpy as np
import jax
import jax.numpy as jnp
from jax import lax
from jax.experimental import pallas as pl
from jax.experimental.pallas import tpu as pltpu

NUM_TIMESTEPS = 1000
_VMEM_LIMIT_BYTES = 32 * 1024 * 1024   # raise v5e's 16MiB default, safe on v7x


def get_beta_schedule(beta_start=1e-4, beta_end=0.02, num=NUM_TIMESTEPS):
    # matches torch: linspace in float64, then cast to float32
    betas = np.linspace(beta_start, beta_end, num, dtype=np.float64)
    return jnp.asarray(betas, dtype=jnp.float32)


def _pick_block_rows(N, D, n_streams, itemsize=4,
                     tile_budget_bytes=24 << 20, max_rows=2048):
    """Largest multiple-of-8 row tile s.t. n_streams x 2 buffers fit the budget."""
    if N <= 8:
        return N                       # block == full second-minor dim (legal)
    rows = tile_budget_bytes // (n_streams * 2 * D * itemsize)
    rows = min(rows, max_rows)
    # keep the grid >= 2 steps when possible (megacore / v7x dual-TC sharding)
    rows = min(rows, max(8, ((N + 1) // 2 // 8) * 8))
    rows = max(8, (rows // 8) * 8)
    return rows


# ---------------------------------------------------------------------------
# Kernel 1: forward-diffusion noising
#   sil_t = sils * sqrt(a) + e * sqrt(1 - a)       (a broadcast per row)
# ---------------------------------------------------------------------------
def _noise_kernel(sils_ref, e_ref, a_ref, out_ref):
    a = a_ref[...]                                   # (blk, 1) f32
    sa = jnp.sqrt(a)                                 # EUP
    sb = jnp.sqrt(jnp.maximum(1.0 - a, 0.0))
    x = sils_ref[...].astype(jnp.float32)
    e = e_ref[...].astype(jnp.float32)
    out_ref[...] = (x * sa + e * sb).astype(out_ref.dtype)


def add_diffusion_noise(sils2d, e2d, a):
    """sils2d, e2d: (N, D); a: (N,) alpha_cumprod gathered at t."""
    N, D = sils2d.shape
    a_col = a.reshape(N, 1).astype(jnp.float32)
    blk = _pick_block_rows(N, D, n_streams=3)        # sils, e, out dominate VMEM
    grid = (pl.cdiv(N, blk),)                        # edge block handled by Pallas
    cost = pl.CostEstimate(
        flops=3 * N * D,
        transcendentals=2 * N,
        bytes_accessed=3 * N * D * 4 + N * 4,
    )
    return pl.pallas_call(
        _noise_kernel,
        out_shape=jax.ShapeDtypeStruct((N, D), sils2d.dtype),
        grid=grid,
        in_specs=[
            pl.BlockSpec((blk, D), lambda i: (i, 0)),
            pl.BlockSpec((blk, D), lambda i: (i, 0)),
            pl.BlockSpec((blk, 1), lambda i: (i, 0)),
        ],
        out_specs=pl.BlockSpec((blk, D), lambda i: (i, 0)),
        compiler_params=pltpu.CompilerParams(
            dimension_semantics=("parallel",),
            vmem_limit_bytes=_VMEM_LIMIT_BYTES,
        ),
        cost_estimate=cost,
    )(sils2d, e2d, a_col)


# ---------------------------------------------------------------------------
# Kernel 2: fused total squared error  sum_{n,c,h,w} (sils - preds)^2
#   (the PyTorch .sum(dim=(1,2,3)).mean(0) == total / N, fused to one scalar)
# ---------------------------------------------------------------------------
def sq_err_total(sils2d, preds2d):
    N, D = sils2d.shape
    blk = _pick_block_rows(N, D, n_streams=2)
    grid_n = pl.cdiv(N, blk)
    needs_mask = (N % blk) != 0

    def kernel(sils_ref, preds_ref, out_ref):
        @pl.when(pl.program_id(0) == 0)
        def _():
            out_ref[...] = jnp.zeros_like(out_ref)
        d = sils_ref[...].astype(jnp.float32) - preds_ref[...].astype(jnp.float32)
        sq = d * d
        if needs_mask:  # zero out the OOB rows of the last (partial) block
            rows = (pl.program_id(0) * blk
                    + lax.broadcasted_iota(jnp.int32, sq.shape, 0))
            sq = jnp.where(rows < N, sq, 0.0)
        out_ref[...] += jnp.sum(sq, keepdims=True)   # (1,1) resident accumulator

    cost = pl.CostEstimate(
        flops=3 * N * D,
        transcendentals=0,
        bytes_accessed=2 * N * D * 4 + 4,
    )
    total = pl.pallas_call(
        kernel,
        out_shape=jax.ShapeDtypeStruct((1, 1), jnp.float32),
        grid=(grid_n,),
        in_specs=[
            pl.BlockSpec((blk, D), lambda i: (i, 0)),
            pl.BlockSpec((blk, D), lambda i: (i, 0)),
        ],
        out_specs=pl.BlockSpec((1, 1), lambda i: (0, 0)),
        compiler_params=pltpu.CompilerParams(
            dimension_semantics=("arbitrary",),      # reduction axis, acc resident
            vmem_limit_bytes=_VMEM_LIMIT_BYTES,
        ),
        cost_estimate=cost,
    )(sils2d, preds2d)
    return total[0, 0]


# ---------------------------------------------------------------------------
# Forward pass of diffgait_diffusion_branch
# ---------------------------------------------------------------------------
def diffgait_diffusion_branch_forward(model, skes, sils, key,
                                      num_timesteps=NUM_TIMESTEPS):
    """skes, sils: (n, c, s, h, w) float32. `model` is the external denoiser."""
    n0, c, s, h, w = sils.shape
    # rearrange 'n c s h w -> (n s) c h w'; sils_r is reused (as sils2d) by both
    # Pallas kernels so the transpose is materialized exactly once.
    # TODO(synk): could fuse this transpose into the noise kernel's index_map to
    # save one HBM pass of sils, at the cost of in-kernel XLU transposes.
    sils_r = jnp.transpose(sils, (0, 2, 1, 3, 4)).reshape(n0 * s, c, h, w)
    skes_r = jnp.transpose(skes, (0, 2, 1, 3, 4)).reshape(n0 * s, c, h, w)
    N = n0 * s
    D = c * h * w

    k_e, k_t = jax.random.split(key)
    # e = torch.randn_like(sils)
    e = jax.random.normal(k_e, sils_r.shape, dtype=sils_r.dtype)
    # antithetic timestep sampling: t = cat([t, T - t - 1])[:n]
    t_half = jax.random.randint(k_t, (N // 2 + 1,), 0, num_timesteps)
    t = jnp.concatenate([t_half, num_timesteps - t_half - 1], axis=0)[:N]

    betas = get_beta_schedule(num=num_timesteps)
    a = jnp.cumprod(1.0 - betas)[t]                  # (N,) alpha_bar at sampled t

    sils2d = sils_r.reshape(N, D)
    e2d = e.reshape(N, D)
    sil_t = add_diffusion_noise(sils2d, e2d, a).reshape(N, c, h, w)

    # TODO(synk): `model` is an external denoiser passed to forward(); a
    # deterministic stand-in is supplied in __main__ (plain JAX glue).
    preds = model(skes_r, sil_t, t.astype(jnp.float32))

    total = sq_err_total(sils2d, preds.reshape(N, D))
    loss = total / jnp.float32(N)
    return loss, preds


# Deterministic stand-in denoiser (the real `model` argument is external).
def toy_model(skes, sil_t, t):
    temb = (t / float(NUM_TIMESTEPS)).reshape(-1, 1, 1, 1)
    return 0.9 * sil_t + 0.1 * skes + 0.01 * temb


if __name__ == "__main__":
    key = jax.random.PRNGKey(0)
    k_sils, k_skes, k_fwd = jax.random.split(key, 3)

    # small shapes: n=2 sequences, c=2 channels, s=4 frames, 16x16 spatial
    n, c, s, h, w = 2, 2, 4, 16, 16
    sils = jax.random.normal(k_sils, (n, c, s, h, w), dtype=jnp.float32)
    skes = jax.random.normal(k_skes, (n, c, s, h, w), dtype=jnp.float32)

    loss, preds = diffgait_diffusion_branch_forward(toy_model, skes, sils, k_fwd)
    jax.block_until_ready((loss, preds))
    assert preds.shape == (n * s, c, h, w)
    assert loss.shape == ()

    # pure-JAX reference check (same RNG draws / timesteps by construction)
    N, D = n * s, c * h * w
    sils_r = jnp.transpose(sils, (0, 2, 1, 3, 4)).reshape(N, c, h, w)
    skes_r = jnp.transpose(skes, (0, 2, 1, 3, 4)).reshape(N, c, h, w)
    k_e, k_t = jax.random.split(k_fwd)
    e_ref = jax.random.normal(k_e, sils_r.shape, dtype=sils_r.dtype)
    t_half = jax.random.randint(k_t, (N // 2 + 1,), 0, NUM_TIMESTEPS)
    t_ref = jnp.concatenate([t_half, NUM_TIMESTEPS - t_half - 1], axis=0)[:N]
    a_ref = jnp.cumprod(1.0 - get_beta_schedule())[t_ref].reshape(-1, 1, 1, 1)
    sil_t_ref = sils_r * jnp.sqrt(a_ref) + e_ref * jnp.sqrt(1.0 - a_ref)
    preds_ref = toy_model(skes_r, sil_t_ref, t_ref.astype(jnp.float32))
    loss_ref = jnp.mean(jnp.sum((sils_r - preds_ref) ** 2, axis=(1, 2, 3)))
    assert jnp.allclose(loss, loss_ref, rtol=1e-3, atol=1e-4)
    assert jnp.allclose(preds, preds_ref, rtol=1e-4, atol=1e-5)

    print("KERNEL_OK")
</pallas_src>

<mosaic_0001>
module attributes {stable_mosaic.version = 11 : i64} {
  func.func @_noise_kernel(%arg0: i32, %arg1: memref<8x512xf32, #tpu.memory_space<vmem>>, %arg2: memref<8x512xf32, #tpu.memory_space<vmem>>, %arg3: memref<8x1xf32, #tpu.memory_space<vmem>>, %arg4: memref<8x512xf32, #tpu.memory_space<vmem>>) attributes {dimension_semantics = [#tpu.dimension_semantics<parallel>], iteration_bounds = array<i64: 1>, scalar_prefetch = 0 : i64, scratch_operands = 0 : i64, tpu.core_type = #tpu.core_type<tc>, window_params = [{transform_indices = @transform_0, window_bounds = array<i64: 8, 512>}, {transform_indices = @transform_1, window_bounds = array<i64: 8, 512>}, {transform_indices = @transform_2, window_bounds = array<i64: 8, 1>}, {transform_indices = @transform_3, window_bounds = array<i64: 8, 512>}]} {
    %c0 = arith.constant 0 : index
    %c0_0 = arith.constant 0 : index
    %0 = vector.load %arg3[%c0, %c0_0] : memref<8x1xf32, #tpu.memory_space<vmem>>, vector<8x1xf32>
    %1 = math.sqrt %0 : vector<8x1xf32>
    %cst = arith.constant 1.000000e+00 : f32
    %2 = vector.broadcast %cst : f32 to vector<8x1xf32>
    %3 = arith.subf %2, %0 : vector<8x1xf32>
    %cst_1 = arith.constant 0.000000e+00 : f32
    %4 = vector.broadcast %cst_1 : f32 to vector<8x1xf32>
    %5 = arith.maximumf %3, %4 : vector<8x1xf32>
    %6 = math.sqrt %5 : vector<8x1xf32>
    %c0_2 = arith.constant 0 : index
    %c0_3 = arith.constant 0 : index
    %7 = vector.load %arg1[%c0_2, %c0_3] : memref<8x512xf32, #tpu.memory_space<vmem>>, vector<8x512xf32>
    %c0_4 = arith.constant 0 : index
    %c0_5 = arith.constant 0 : index
    %8 = vector.load %arg2[%c0_4, %c0_5] : memref<8x512xf32, #tpu.memory_space<vmem>>, vector<8x512xf32>
    %9 = vector.broadcast %1 : vector<8x1xf32> to vector<8x512xf32>
    %10 = arith.mulf %7, %9 : vector<8x512xf32>
    %11 = vector.broadcast %6 : vector<8x1xf32> to vector<8x512xf32>
    %12 = arith.mulf %8, %11 : vector<8x512xf32>
    %13 = arith.addf %10, %12 : vector<8x512xf32>
    %c0_6 = arith.constant 0 : index
    %c0_7 = arith.constant 0 : index
    %14 = vector.load %arg4[%c0_6, %c0_7] : memref<8x512xf32, #tpu.memory_space<vmem>>, vector<8x512xf32>
    tpu.vector_store %arg4[%c0_6, %c0_7], %13 {strides = array<i32>} : memref<8x512xf32, #tpu.memory_space<vmem>>, vector<8x512xf32>,
    return
  }
  func.func @transform_0(%arg0: i32) -> (i32, i32) {
    %c0_i32 = arith.constant 0 : i32
    %c0_i32_0 = arith.constant 0 : i32
    return %arg0, %c0_i32 : i32, i32
  }
  func.func @transform_1(%arg0: i32) -> (i32, i32) {
    %c0_i32 = arith.constant 0 : i32
    %c0_i32_0 = arith.constant 0 : i32
    return %arg0, %c0_i32 : i32, i32
  }
  func.func @transform_2(%arg0: i32) -> (i32, i32) {
    %c0_i32 = arith.constant 0 : i32
    %c0_i32_0 = arith.constant 0 : i32
    return %arg0, %c0_i32 : i32, i32
  }
  func.func @transform_3(%arg0: i32) -> (i32, i32) {
    %c0_i32 = arith.constant 0 : i32
    %c0_i32_0 = arith.constant 0 : i32
    return %arg0, %c0_i32 : i32, i32
  }
}

</mosaic_0001>

<bundles_post_ra>
// kernel: tpu_custom_call.1
= control target key start
LH: loop header
LB: loop body
LE: loop exit
PB: predicated region body
PF: predicated region fallthrough
CT: control target
= control target key end

     0   :  { %8 = vsyncpa [#allocation3], 0  ;;  %s250_s0 = inlined_call_operand.hbm [shape: f32[8,512], index: 0, kind: input, shape index: {}]   ;;  %s251_s1 = inlined_call_operand.hbm [shape: f32[8,512], index: 1, kind: input, shape index: {}]   ;;  %s252_s2 = inlined_call_operand.vmem [shape: f32[8,1], index: 2, kind: input, shape index: {}]   ;;  %s253_s3 = inlined_call_operand.hbm [shape: f32[8,512], index: 3, kind: output, shape index: {}]  }
   0x1   :  { %9 = vsyncpa [#allocation6], 0 }
   0x2   :  { %10 = vsyncpa [#allocation4], 0  ;;  %s187_s12 = smov [#allocation2]   ;;  %s188_s14 = smov [#allocation5]  }
   0x3   :  { %s17_s13 = sshll.u32 %s187_s12, 4  ;;  %s27_s15 = sshll.u32 %s188_s14, 4  ;;  %s18_s13 = int_to_ptr.vmem [resolvable:$true] %s17_s13  ;;  %s28_s15 = int_to_ptr.vmem [resolvable:$true] %s27_s15 }
   0x4   :  { %s115_s18 = scalar_lea.hbm %s250_s0, 512 }
   0x5   :  { %p116_p0 = scmp.ne.s32.totalorder %s250_s0, %s115_s18  ;;  %p119_p1 = scmp.lt.u32.totalorder %s115_s18, %s250_s0 }
   0x7   :  { %p121_p2 = pnand %p119_p1, %p116_p0 }
   0x9   :  { %124 = shalt.err (!%p121_p2)
}
   0xa   :  { %s125_s23 = scalar_lea.vmem %s18_s13, 512  ;;  %p130_p4 = scmp.lt.s32.totalorder %s18_s13, %s18_s13 }
   0xb   :  { %p126_p3 = scmp.ne.s32.totalorder %s18_s13, %s125_s23  ;;  %p131_p5 = scmp.lt.s32.totalorder %s125_s23, %s125_s23 }
   0xd   :  { %p132_p6 = por %p131_p5, %p130_p4 }
   0xf   :  { %p133_p7 = pnand %p132_p6, %p126_p3 }
  0x11   :  { %136 = shalt.err (!%p133_p7)
}
  0x12   :  { %20 = dma.hbm_to_vmem [thread:$0]  %s250_s0, 512, %s18_s13, [#allocation3]  }
  0x13   :  { %s137_s28 = scalar_lea.hbm %s251_s1, 512 }
  0x14   :  { %p138_p8 = scmp.ne.s32.totalorder %s251_s1, %s137_s28  ;;  %p141_p9 = scmp.lt.u32.totalorder %s137_s28, %s251_s1 }
  0x16   :  { %p143_p10 = pnand %p141_p9, %p138_p8 }
  0x18   :  { %146 = shalt.err (!%p143_p10)
}
  0x19   :  { %s147_s6 = scalar_lea.vmem %s28_s15, 512  ;;  %p152_p12 = scmp.lt.s32.totalorder %s28_s15, %s28_s15 }
  0x1a   :  { %p148_p11 = scmp.ne.s32.totalorder %s28_s15, %s147_s6  ;;  %p153_p13 = scmp.lt.s32.totalorder %s147_s6, %s147_s6 }
  0x1c   :  { %p154_p0 = por %p153_p13, %p152_p12 }
  0x1e   :  { %p155_p1 = pnand %p154_p0, %p148_p11 }
  0x20   :  { %158 = shalt.err (!%p155_p1)
}
  0x21   :  { %30 = dma.hbm_to_vmem [thread:$0]  %s251_s1, 512, %s28_s15, [#allocation6]  }
  0x22   :  { %181 = dma.done.wait [#allocation3], 512  }
  0x23   :  { %182 = vsyncadd [#allocation3], 4294966784 }
  0x24   :  { %183 = dma.done.wait [#allocation6], 512  }
  0x25   :  { %184 = vsyncadd [#allocation6], 4294966784  ;;  %v189_v0 = vmov 0   ;;  %v39_v1 = vld [vmem:[%s252_s2] sm:$0xff]  ;;  %v57_v16 = vld [vmem:[#allocation2 + $0x8] sm:$0xff]  ;;  %s190_s1 = smov [#allocation7]  }
  0x26   :  { %110 = vset.pattern.permute.xlu0 %v189_v0  ;;  %111 = vrsqrt.f32 %v39_v1  ;;  %v47_v2 = vsub.f32 1.0, %v39_v1  ;;  %vm42_vm0 = vcmp.eq.f32.partialorder %v39_v1, inf  ;;  %v45_v5 = vand.u32 2147483648, %v39_v1  ;;  %v56_v15 = vld [vmem:[#allocation2] sm:$0xff]  ;;  %v58_v17 = vld [vmem:[#allocation2 + $0x10] sm:$0xff]  ;;  %v59_v18 = vld [vmem:[#allocation2 + $0x18] sm:$0xff] }
  0x27   :  { %vm44_vm1 = vcmp.eq.f32.partialorder %v39_v1, 0.0  ;;  %v60_v19 = vld [vmem:[#allocation5] sm:$0xff]  ;;  %v61_v20 = vld [vmem:[#allocation5 + $0x8] sm:$0xff]  ;;  %v62_v21 = vld [vmem:[#allocation5 + $0x10] sm:$0xff]  ;;  %s96_s2 = sshll.u32 %s190_s1, 4  ;;  %s97_s2 = int_to_ptr.vmem [resolvable:$true] %s96_s2 }
  0x28   :  { %v48_v3 = vmax.f32 %v47_v2, 0.0  ;;  %v63_v22 = vld [vmem:[#allocation5 + $0x18] sm:$0xff]  ;;  %s159_s10 = scalar_lea.vmem %s97_s2, 512  ;;  %p164_p3 = scmp.lt.s32.totalorder %s97_s2, %s97_s2 }
  0x29   :  { %p160_p2 = scmp.ne.s32.totalorder %s97_s2, %s159_s10  ;;  %p165_p4 = scmp.lt.s32.totalorder %s159_s10, %s159_s10 }
  0x2a   :  { %113 = vrsqrt.f32 %v48_v3  ;;  %vm51_vm2 = vcmp.eq.f32.partialorder %v48_v3, inf  ;;  %v54_v10 = vand.u32 2147483648, %v48_v3  ;;  %vm53_vm3 = vcmp.eq.f32.partialorder %v48_v3, 0.0 }
  0x2b   :  { %p166_p5 = por %p165_p4, %p164_p3 }
  0x2d   :  { %p167_p6 = pnand %p166_p5, %p160_p2 }
  0x30   :  { %v112_v4 = vpop.eup %111 }
  0x31   :  { %v41_v6 = vmul.f32 %v112_v4, %v39_v1 }
  0x33   :  { %v43_v7 = vsel %vm42_vm0, %v39_v1, %v41_v6 }
  0x34   :  { %v46_v8 = vsel %vm44_vm1, %v45_v5, %v43_v7  ;;  %v114_v9 = vpop.eup %113 }
  0x35   :  { %66 = vperm.xlu0 %110, %v46_v8   ;;  %v50_v11 = vmul.f32 %v114_v9, %v48_v3 }
  0x37   :  { %v52_v12 = vsel %vm51_vm2, %v48_v3, %v50_v11 }
  0x38   :  { %v55_v13 = vsel %vm53_vm3, %v54_v10, %v52_v12 }
  0x39   :  { %75 = vperm.xlu0 %110, %v55_v13  }
  0xb4   :  { %v67_v14 = vpop.permute.xlu0 %66 }
  0xb5   :  { %v69_v23 = vmul.f32 %v67_v14, %v56_v15  ;;  %v70_v24 = vmul.f32 %v67_v14, %v57_v16  ;;  %v71_v25 = vmul.f32 %v67_v14, %v58_v17  ;;  %v72_v26 = vmul.f32 %v67_v14, %v59_v18 }
  0xb8   :  { %v76_v27 = vpop.permute.xlu0 %75 }
  0xb9   :  { %v78_v28 = vmul.f32 %v76_v27, %v60_v19  ;;  %v79_v29 = vmul.f32 %v76_v27, %v61_v20  ;;  %v80_v30 = vmul.f32 %v76_v27, %v62_v21  ;;  %v81_v31 = vmul.f32 %v76_v27, %v63_v22 }
  0xbb   :  { %v82_v32 = vadd.f32 %v78_v28, %v69_v23  ;;  %v83_v33 = vadd.f32 %v79_v29, %v70_v24  ;;  %v84_v34 = vadd.f32 %v80_v30, %v71_v25  ;;  %v85_v35 = vadd.f32 %v81_v31, %v72_v26 }
  0xbd   :  { %86 = vst [vmem:[#allocation7] sm:$0xff] %v82_v32  ;;  %87 = vst [vmem:[#allocation7 + $0x8] sm:$0xff] %v83_v33 }
  0xbe   :  { %88 = vst [vmem:[#allocation7 + $0x10] sm:$0xff] %v84_v34  ;;  %89 = vst [vmem:[#allocation7 + $0x18] sm:$0xff] %v85_v35 }
  0xbf   :  { %170 = shalt.err (!%p167_p6)
}
  0xc0   :  { %s171_s13 = scalar_lea.hbm %s253_s3, 512 }
  0xc1   :  { %p172_p7 = scmp.ne.s32.totalorder %s253_s3, %s171_s13  ;;  %p175_p8 = scmp.lt.u32.totalorder %s171_s13, %s253_s3 }
  0xc3   :  { %p177_p9 = pnand %p175_p8, %p172_p7 }
  0xc5   :  { %180 = shalt.err (!%p177_p9)
}
  0xc6   :  { %99 = dma.vmem_to_hbm [thread:$0]  %s97_s2, 512, %s253_s3, [#allocation4]  }
  0xc7   :  { %185 = dma.done.wait [#allocation4], 512  }
  0xc8   :  { %186 = vsyncadd [#allocation4], 4294966784 }
  0xc9   :  { %103 = vsyncpa [#allocation3], 1 }
  0xca   :  { %104 = vsyncpa [#allocation6], 1 }
  0xcb   :  { %105 = vsyncpa [#allocation4], 1 }

</bundles_post_ra>
